<compile_context>
chip_gen: v5e
topology: v5e:2x2
jax: 0.10.0
libtpu: 0.0.40
codegen_flags: <defaults>
</compile_context>

<pallas_src>
import functools

import jax
import jax.numpy as jnp
from jax.experimental import pallas as pl
from jax.experimental.pallas import tpu as pltpu

_TILE_BYTES = 2 * 1024 * 1024  # target per-input block size


def _score_term(x, apply_sigmoid):
    # 2*sigmoid(x) - 1 == tanh(x/2): one EUP op instead of exp + recip + scale.
    if apply_sigmoid:
        return jnp.tanh(0.5 * x)
    return 2.0 * x - 1.0


def _fold_sublanes(v, rows, cols):
    # (rows, cols) -> (8, cols): sum over sublane groups; pure vreg adds (VALU).
    return v.reshape(rows // 8, 8, cols).sum(axis=0)


# ----------------------------------------------------------------------------
# Path A: NCHW-direct (W >= 128, H % 8 == 0) — no wrapper copy, batch-parallel.
# ----------------------------------------------------------------------------
def _make_nchw_kernel(v1, v2, apply_sigmoid, tm_h, W):
    dv = v2 - v1

    def kernel(x_ref, t_ref, num_ref, den_ref):
        h = pl.program_id(1)

        @pl.when(h == 0)
        def _():
            num_ref[...] = jnp.zeros_like(num_ref)
            den_ref[...] = jnp.zeros_like(den_ref)

        x = x_ref[...].astype(jnp.float32)
        t = t_ref[...].astype(jnp.float32)
        a = _score_term(x, apply_sigmoid)
        b = 2.0 * t - 1.0
        w = t * dv + v1
        p = w * a
        q = w * b
        num_ref[...] += _fold_sublanes(p * q, tm_h, W)
        den_ref[...] += _fold_sublanes(p * p + q * q, tm_h, W)

    return kernel


def _nchw_path(inputs, target, v1, v2, apply_sigmoid):
    B, _, H, W = inputs.shape
    itembytes = max(inputs.dtype.itemsize, target.dtype.itemsize)

    # Largest multiple of 8 that divides H with a block of at most ~2 MiB.
    cap = max(8, (_TILE_BYTES // (W * itembytes)) // 8 * 8)
    tm_h = 8
    d = min(H, cap)
    d -= d % 8
    while d >= 8:
        if H % d == 0:
            tm_h = d
            break
        d -= 8
    n_h = H // tm_h

    kernel = _make_nchw_kernel(v1, v2, apply_sigmoid, tm_h, W)

    needed = (2 * tm_h * W * (inputs.dtype.itemsize + target.dtype.itemsize)
              + 4 * 8 * W * 4 + (1 << 20))
    vmem_limit = int(min(32 << 20, max(16 << 20, needed)))

    num_p, den_p = pl.pallas_call(
        kernel,
        out_shape=(jax.ShapeDtypeStruct((B, 8, W), jnp.float32),
                   jax.ShapeDtypeStruct((B, 8, W), jnp.float32)),
        grid_spec=pltpu.PrefetchScalarGridSpec(
            num_scalar_prefetch=0,
            grid=(B, n_h),
            in_specs=[
                pl.BlockSpec((None, None, tm_h, W), lambda b, h: (b, 0, h, 0)),
                pl.BlockSpec((None, None, tm_h, W), lambda b, h: (b, 0, h, 0)),
            ],
            out_specs=[
                pl.BlockSpec((None, 8, W), lambda b, h: (b, 0, 0)),
                pl.BlockSpec((None, 8, W), lambda b, h: (b, 0, 0)),
            ],
        ),
        compiler_params=pltpu.CompilerParams(
            dimension_semantics=("parallel", "arbitrary"),
            vmem_limit_bytes=vmem_limit),
    )(inputs, target)
    return num_p, den_p


# ----------------------------------------------------------------------------
# Path B: lane-dense fallback (tiny W) — flatten channel 0, mask only last tile.
# ----------------------------------------------------------------------------
def _make_flat_kernel(v1, v2, apply_sigmoid, tm, L, full_rows, rem, has_pad):
    dv = v2 - v1

    def kernel(x_ref, t_ref, num_ref, den_ref):
        i = pl.program_id(0)

        @pl.when(i == 0)
        def _():
            num_ref[...] = jnp.zeros_like(num_ref)
            den_ref[...] = jnp.zeros_like(den_ref)

        def accumulate(masked):
            x = x_ref[...].astype(jnp.float32)
            t = t_ref[...].astype(jnp.float32)
            a = _score_term(x, apply_sigmoid)
            b = 2.0 * t - 1.0
            w = t * dv + v1
            p = w * a
            q = w * b
            num_c = p * q
            den_c = p * p + q * q
            if masked:
                # Row-granular validity (no N-sized int32 index -> no overflow).
                r = jax.lax.broadcasted_iota(jnp.int32, (tm, L), 0)
                c = jax.lax.broadcasted_iota(jnp.int32, (tm, L), 1)
                row = i * tm + r
                valid = (row < full_rows) | ((row == full_rows) & (c < rem))
                num_c = jnp.where(valid, num_c, 0.0)
                den_c = jnp.where(valid, den_c, 0.0)
            num_ref[...] += _fold_sublanes(num_c, tm, L)
            den_ref[...] += _fold_sublanes(den_c, tm, L)

        if has_pad:
            last = pl.num_programs(0) - 1

            @pl.when(i < last)
            def _():
                accumulate(False)

            @pl.when(i == last)
            def _():
                accumulate(True)
        else:
            accumulate(False)

    return kernel


def _flat_path(inputs, target, v1, v2, apply_sigmoid, narrow_binary_target):
    B, _, H, W = inputs.shape
    N = B * H * W
    L = 512

    # This path already copies channel 0 (tiny-W fallback); optionally narrow a
    # float32 0/1 mask to bf16 here to halve its HBM bytes (exact for 0/1 values).
    x0 = inputs[:, 0].reshape(-1)
    t0 = target[:, 0].reshape(-1)
    if narrow_binary_target and t0.dtype == jnp.float32:
        t0 = t0.astype(jnp.bfloat16)

    rows_needed = -(-N // L)
    tm = min(1024, max(8, ((rows_needed + 7) // 8) * 8))   # ~2 MiB f32 blocks max
    grid = -(-rows_needed // tm)
    padded_rows = grid * tm
    padded_N = padded_rows * L
    has_pad = padded_N != N
    if has_pad:
        x0 = jnp.pad(x0, (0, padded_N - N))
        t0 = jnp.pad(t0, (0, padded_N - N))
    x2 = x0.reshape(padded_rows, L)
    t2 = t0.reshape(padded_rows, L)

    kernel = _make_flat_kernel(v1, v2, apply_sigmoid, tm, L,
                               N // L, N % L, has_pad)

    needed = (2 * tm * L * (x2.dtype.itemsize + t2.dtype.itemsize)
              + 4 * 8 * L * 4 + (1 << 20))
    vmem_limit = int(min(32 << 20, max(16 << 20, needed)))

    num_p, den_p = pl.pallas_call(
        kernel,
        out_shape=(jax.ShapeDtypeStruct((8, L), jnp.float32),
                   jax.ShapeDtypeStruct((8, L), jnp.float32)),
        grid_spec=pltpu.PrefetchScalarGridSpec(
            num_scalar_prefetch=0,
            grid=(grid,),
            in_specs=[
                pl.BlockSpec((tm, L), lambda i: (i, 0)),
                pl.BlockSpec((tm, L), lambda i: (i, 0)),
            ],
            out_specs=[
                pl.BlockSpec((8, L), lambda i: (0, 0)),
                pl.BlockSpec((8, L), lambda i: (0, 0)),
            ],
        ),
        compiler_params=pltpu.CompilerParams(
            dimension_semantics=("arbitrary",),   # carried output accumulators
            vmem_limit_bytes=vmem_limit),
    )(x2, t2)
    return num_p, den_p


# ----------------------------------------------------------------------------
# Public wrapper.
# ----------------------------------------------------------------------------
@functools.partial(
    jax.jit, static_argnames=("sigmoid", "v1", "v2", "narrow_binary_target"))
def wsdice_loss_binary(inputs, target, sigmoid=True, v1=0.85, v2=0.15,
                       narrow_binary_target=False):
    """Forward pass of WSDiceLoss_Binary. inputs/target: (B, C, *spatial)."""
    assert inputs.shape == target.shape, (
        f"predict {inputs.shape} & target {target.shape} shape do not match")
    assert inputs.ndim >= 3

    # Canonicalize to (B, C, H', W): merge intermediate spatial dims (bitcast
    # reshape, no HBM copy).
    B, C = inputs.shape[0], inputs.shape[1]
    Wd = inputs.shape[-1]
    inputs4 = inputs.reshape(B, C, -1, Wd)
    target4 = target.reshape(B, C, -1, Wd)
    H = inputs4.shape[2]

    v1f, v2f, apply_sigmoid = float(v1), float(v2), bool(sigmoid)

    if Wd >= 128 and H % 8 == 0:
        # No-copy NCHW-direct path; channel 0 selected by the BlockSpec.
        num_p, den_p = _nchw_path(inputs4, target4, v1f, v2f, apply_sigmoid)
    else:
        # Tiny-W fallback: lane-dense (rows, 512) slab of channel 0.
        num_p, den_p = _flat_path(inputs4, target4, v1f, v2f, apply_sigmoid,
                                  bool(narrow_binary_target))

    smooth = 1.0
    intersect = jnp.sum(num_p)
    denom = jnp.sum(den_p)
    return 1.0 - (2.0 * intersect + smooth) / (denom + smooth)


def _reference(inputs, target, sigmoid=True, v1=0.85, v2=0.15):
    """Plain-JAX reference mirroring the PyTorch module."""
    if sigmoid:
        inputs = jax.nn.sigmoid(inputs)
    score = inputs[:, 0].astype(jnp.float32)
    tgt = target[:, 0].astype(jnp.float32)
    smooth = 1.0
    w = tgt * (v2 - v1) + v1
    score = w * (2.0 * score - 1.0)
    tgt = w * (2.0 * tgt - 1.0)
    intersect = jnp.sum(score * tgt)
    y_sum = jnp.sum(tgt * tgt)
    z_sum = jnp.sum(score * score)
    return 1.0 - (2.0 * intersect + smooth) / (z_sum + y_sum + smooth)


if __name__ == "__main__":
    key = jax.random.PRNGKey(0)
    k1, k2, k3, k4 = jax.random.split(key, 4)

    # Case 1: tiny W -> lane-dense fallback path (masked last tile).
    B, C, H, W = 2, 4, 16, 16
    x = jax.random.normal(k1, (B, C, H, W), dtype=jnp.float32)
    t = jax.random.bernoulli(k2, p=0.3, shape=(B, C, H, W)).astype(jnp.float32)

    loss = jax.block_until_ready(wsdice_loss_binary(x, t, sigmoid=True))
    ref = _reference(x, t, sigmoid=True)
    assert jnp.allclose(loss, ref, atol=1e-5, rtol=1e-4), (loss, ref)

    loss_ns = jax.block_until_ready(wsdice_loss_binary(x, t, sigmoid=False))
    ref_ns = _reference(x, t, sigmoid=False)
    assert jnp.allclose(loss_ns, ref_ns, atol=1e-5, rtol=1e-4), (loss_ns, ref_ns)

    # Case 2: lane-dense W -> NCHW-direct (no prep copy), batch-parallel grid.
    B, C, H, W = 2, 3, 16, 128
    x2 = jax.random.normal(k3, (B, C, H, W), dtype=jnp.float32)
    t2 = jax.random.bernoulli(k4, p=0.5, shape=(B, C, H, W)).astype(jnp.float32)

    loss2 = jax.block_until_ready(wsdice_loss_binary(x2, t2, sigmoid=True))
    ref2 = _reference(x2, t2, sigmoid=True)
    assert jnp.allclose(loss2, ref2, atol=1e-5, rtol=1e-4), (loss2, ref2)

    print("KERNEL_OK")
</pallas_src>

<mosaic_0001>
module attributes {stable_mosaic.version = 11 : i64} {
  func.func @kernel(%arg0: i32, %arg1: memref<8x512xf32, #tpu.memory_space<vmem>>, %arg2: memref<8x512xf32, #tpu.memory_space<vmem>>, %arg3: memref<8x512xf32, #tpu.memory_space<vmem>>, %arg4: memref<8x512xf32, #tpu.memory_space<vmem>>) attributes {dimension_semantics = [#tpu.dimension_semantics<arbitrary>], iteration_bounds = array<i64: 1>, scalar_prefetch = 0 : i64, scratch_operands = 0 : i64, tpu.core_type = #tpu.core_type<tc>, window_params = [{transform_indices = @transform_0, window_bounds = array<i64: 8, 512>}, {transform_indices = @transform_1, window_bounds = array<i64: 8, 512>}, {pipeline_mode = #tpu.pipeline_mode<synchronous>, transform_indices = @transform_2, window_bounds = array<i64: 8, 512>}, {pipeline_mode = #tpu.pipeline_mode<synchronous>, transform_indices = @transform_3, window_bounds = array<i64: 8, 512>}]} {
    %c0_i32 = arith.constant 0 : i32
    %0 = arith.cmpi eq, %arg0, %c0_i32 : i32
    %1 = arith.extui %0 : i1 to i32
    %c0_i32_0 = arith.constant 0 : i32
    %2 = arith.cmpi ne, %1, %c0_i32_0 : i32
    scf.if %2 {
      %cst = arith.constant 0.000000e+00 : f32
      %9 = vector.broadcast %cst : f32 to vector<8x512xf32>
      %c0 = arith.constant 0 : index
      %c0_5 = arith.constant 0 : index
      %10 = vector.load %arg3[%c0, %c0_5] : memref<8x512xf32, #tpu.memory_space<vmem>>, vector<8x512xf32>
      tpu.vector_store %arg3[%c0, %c0_5], %9 {strides = array<i32>} : memref<8x512xf32, #tpu.memory_space<vmem>>, vector<8x512xf32>,
      %cst_6 = arith.constant 0.000000e+00 : f32
      %11 = vector.broadcast %cst_6 : f32 to vector<8x512xf32>
      %c0_7 = arith.constant 0 : index
      %c0_8 = arith.constant 0 : index
      %12 = vector.load %arg4[%c0_7, %c0_8] : memref<8x512xf32, #tpu.memory_space<vmem>>, vector<8x512xf32>
      tpu.vector_store %arg4[%c0_7, %c0_8], %11 {strides = array<i32>} : memref<8x512xf32, #tpu.memory_space<vmem>>, vector<8x512xf32>,
    } else {
    }
    %c0_i32_1 = arith.constant 0 : i32
    %3 = arith.cmpi slt, %arg0, %c0_i32_1 : i32
    %4 = arith.extui %3 : i1 to i32
    %c0_i32_2 = arith.constant 0 : i32
    %5 = arith.cmpi ne, %4, %c0_i32_2 : i32
    scf.if %5 {
      %c0 = arith.constant 0 : index
      %c0_5 = arith.constant 0 : index
      %9 = vector.load %arg1[%c0, %c0_5] : memref<8x512xf32, #tpu.memory_space<vmem>>, vector<8x512xf32>
      %c0_6 = arith.constant 0 : index
      %c0_7 = arith.constant 0 : index
      %10 = vector.load %arg2[%c0_6, %c0_7] : memref<8x512xf32, #tpu.memory_space<vmem>>, vector<8x512xf32>
      %cst = arith.constant 5.000000e-01 : f32
      %11 = vector.broadcast %cst : f32 to vector<8x512xf32>
      %12 = arith.mulf %11, %9 : vector<8x512xf32>
      %13 = math.tanh %12 : vector<8x512xf32>
      %cst_8 = arith.constant 2.000000e+00 : f32
      %14 = vector.broadcast %cst_8 : f32 to vector<8x512xf32>
      %15 = arith.mulf %14, %10 : vector<8x512xf32>
      %cst_9 = arith.constant 1.000000e+00 : f32
      %16 = vector.broadcast %cst_9 : f32 to vector<8x512xf32>
      %17 = arith.subf %15, %16 : vector<8x512xf32>
      %cst_10 = arith.constant -0.699999988 : f32
      %18 = vector.broadcast %cst_10 : f32 to vector<8x512xf32>
      %19 = arith.mulf %10, %18 : vector<8x512xf32>
      %cst_11 = arith.constant 8.500000e-01 : f32
      %20 = vector.broadcast %cst_11 : f32 to vector<8x512xf32>
      %21 = arith.addf %19, %20 : vector<8x512xf32>
      %22 = arith.mulf %21, %13 : vector<8x512xf32>
      %23 = arith.mulf %21, %17 : vector<8x512xf32>
      %24 = arith.mulf %22, %23 : vector<8x512xf32>
      %25 = arith.mulf %22, %22 : vector<8x512xf32>
      %26 = arith.mulf %23, %23 : vector<8x512xf32>
      %27 = arith.addf %25, %26 : vector<8x512xf32>
      %c0_12 = arith.constant 0 : index
      %c0_13 = arith.constant 0 : index
      %28 = vector.load %arg3[%c0_12, %c0_13] : memref<8x512xf32, #tpu.memory_space<vmem>>, vector<8x512xf32>
      %29 = vector.shape_cast %24 : vector<8x512xf32> to vector<1x8x512xf32>
      %cst_14 = arith.constant dense<0.000000e+00> : vector<8x512xf32>
      %30 = vector.multi_reduction <add>, %29, %cst_14 [0] : vector<1x8x512xf32> to vector<8x512xf32>
      %31 = arith.addf %28, %30 : vector<8x512xf32>
      %c0_15 = arith.constant 0 : index
      %c0_16 = arith.constant 0 : index
      %32 = vector.load %arg3[%c0_15, %c0_16] : memref<8x512xf32, #tpu.memory_space<vmem>>, vector<8x512xf32>
      tpu.vector_store %arg3[%c0_15, %c0_16], %31 {strides = array<i32>} : memref<8x512xf32, #tpu.memory_space<vmem>>, vector<8x512xf32>,
      %c0_17 = arith.constant 0 : index
      %c0_18 = arith.constant 0 : index
      %33 = vector.load %arg4[%c0_17, %c0_18] : memref<8x512xf32, #tpu.memory_space<vmem>>, vector<8x512xf32>
      %34 = vector.shape_cast %27 : vector<8x512xf32> to vector<1x8x512xf32>
      %cst_19 = arith.constant dense<0.000000e+00> : vector<8x512xf32>
      %35 = vector.multi_reduction <add>, %34, %cst_19 [0] : vector<1x8x512xf32> to vector<8x512xf32>
      %36 = arith.addf %33, %35 : vector<8x512xf32>
      %c0_20 = arith.constant 0 : index
      %c0_21 = arith.constant 0 : index
      %37 = vector.load %arg4[%c0_20, %c0_21] : memref<8x512xf32, #tpu.memory_space<vmem>>, vector<8x512xf32>
      tpu.vector_store %arg4[%c0_20, %c0_21], %36 {strides = array<i32>} : memref<8x512xf32, #tpu.memory_space<vmem>>, vector<8x512xf32>,
    } else {
    }
    %c0_i32_3 = arith.constant 0 : i32
    %6 = arith.cmpi eq, %arg0, %c0_i32_3 : i32
    %7 = arith.extui %6 : i1 to i32
    %c0_i32_4 = arith.constant 0 : i32
    %8 = arith.cmpi ne, %7, %c0_i32_4 : i32
    scf.if %8 {
      %c0 = arith.constant 0 : index
      %c0_5 = arith.constant 0 : index
      %9 = vector.load %arg1[%c0, %c0_5] : memref<8x512xf32, #tpu.memory_space<vmem>>, vector<8x512xf32>
      %c0_6 = arith.constant 0 : index
      %c0_7 = arith.constant 0 : index
      %10 = vector.load %arg2[%c0_6, %c0_7] : memref<8x512xf32, #tpu.memory_space<vmem>>, vector<8x512xf32>
      %cst = arith.constant 5.000000e-01 : f32
      %11 = vector.broadcast %cst : f32 to vector<8x512xf32>
      %12 = arith.mulf %11, %9 : vector<8x512xf32>
      %13 = math.tanh %12 : vector<8x512xf32>
      %cst_8 = arith.constant 2.000000e+00 : f32
      %14 = vector.broadcast %cst_8 : f32 to vector<8x512xf32>
      %15 = arith.mulf %14, %10 : vector<8x512xf32>
      %cst_9 = arith.constant 1.000000e+00 : f32
      %16 = vector.broadcast %cst_9 : f32 to vector<8x512xf32>
      %17 = arith.subf %15, %16 : vector<8x512xf32>
      %cst_10 = arith.constant -0.699999988 : f32
      %18 = vector.broadcast %cst_10 : f32 to vector<8x512xf32>
      %19 = arith.mulf %10, %18 : vector<8x512xf32>
      %cst_11 = arith.constant 8.500000e-01 : f32
      %20 = vector.broadcast %cst_11 : f32 to vector<8x512xf32>
      %21 = arith.addf %19, %20 : vector<8x512xf32>
      %22 = arith.mulf %21, %13 : vector<8x512xf32>
      %23 = arith.mulf %21, %17 : vector<8x512xf32>
      %24 = arith.mulf %22, %23 : vector<8x512xf32>
      %25 = arith.mulf %22, %22 : vector<8x512xf32>
      %26 = arith.mulf %23, %23 : vector<8x512xf32>
      %27 = arith.addf %25, %26 : vector<8x512xf32>
      %28 = tpu.iota {dimensions = array<i32: 0>} : vector<8x512xi32>
      %29 = tpu.iota {dimensions = array<i32: 1>} : vector<8x512xi32>
      %c8_i32 = arith.constant 8 : i32
      %30 = arith.muli %arg0, %c8_i32 : i32
      %31 = vector.broadcast %30 : i32 to vector<8x512xi32>
      %32 = arith.addi %31, %28 : vector<8x512xi32>
      %c1_i32 = arith.constant 1 : i32
      %33 = vector.broadcast %c1_i32 : i32 to vector<8x512xi32>
      %34 = arith.cmpi slt, %32, %33 : vector<8x512xi32>
      %c1_i32_12 = arith.constant 1 : i32
      %35 = vector.broadcast %c1_i32_12 : i32 to vector<8x512xi32>
      %36 = arith.cmpi eq, %32, %35 : vector<8x512xi32>
      %c0_i32_13 = arith.constant 0 : i32
      %37 = vector.broadcast %c0_i32_13 : i32 to vector<8x512xi32>
      %38 = arith.cmpi slt, %29, %37 : vector<8x512xi32>
      %39 = arith.andi %36, %38 : vector<8x512xi1>
      %40 = arith.ori %34, %39 : vector<8x512xi1>
      %cst_14 = arith.constant 0.000000e+00 : f32
      %41 = vector.broadcast %cst_14 : f32 to vector<8x512xf32>
      %42 = arith.select %40, %24, %41 : vector<8x512xi1>, vector<8x512xf32>
      %cst_15 = arith.constant 0.000000e+00 : f32
      %43 = vector.broadcast %cst_15 : f32 to vector<8x512xf32>
      %44 = arith.select %40, %27, %43 : vector<8x512xi1>, vector<8x512xf32>
      %c0_16 = arith.constant 0 : index
      %c0_17 = arith.constant 0 : index
      %45 = vector.load %arg3[%c0_16, %c0_17] : memref<8x512xf32, #tpu.memory_space<vmem>>, vector<8x512xf32>
      %46 = vector.shape_cast %42 : vector<8x512xf32> to vector<1x8x512xf32>
      %cst_18 = arith.constant dense<0.000000e+00> : vector<8x512xf32>
      %47 = vector.multi_reduction <add>, %46, %cst_18 [0] : vector<1x8x512xf32> to vector<8x512xf32>
      %48 = arith.addf %45, %47 : vector<8x512xf32>
      %c0_19 = arith.constant 0 : index
      %c0_20 = arith.constant 0 : index
      %49 = vector.load %arg3[%c0_19, %c0_20] : memref<8x512xf32, #tpu.memory_space<vmem>>, vector<8x512xf32>
      tpu.vector_store %arg3[%c0_19, %c0_20], %48 {strides = array<i32>} : memref<8x512xf32, #tpu.memory_space<vmem>>, vector<8x512xf32>,
      %c0_21 = arith.constant 0 : index
      %c0_22 = arith.constant 0 : index
      %50 = vector.load %arg4[%c0_21, %c0_22] : memref<8x512xf32, #tpu.memory_space<vmem>>, vector<8x512xf32>
      %51 = vector.shape_cast %44 : vector<8x512xf32> to vector<1x8x512xf32>
      %cst_23 = arith.constant dense<0.000000e+00> : vector<8x512xf32>
      %52 = vector.multi_reduction <add>, %51, %cst_23 [0] : vector<1x8x512xf32> to vector<8x512xf32>
      %53 = arith.addf %50, %52 : vector<8x512xf32>
      %c0_24 = arith.constant 0 : index
      %c0_25 = arith.constant 0 : index
      %54 = vector.load %arg4[%c0_24, %c0_25] : memref<8x512xf32, #tpu.memory_space<vmem>>, vector<8x512xf32>
      tpu.vector_store %arg4[%c0_24, %c0_25], %53 {strides = array<i32>} : memref<8x512xf32, #tpu.memory_space<vmem>>, vector<8x512xf32>,
    } else {
    }
    return
  }
  func.func @transform_0(%arg0: i32) -> (i32, i32) {
    %c0_i32 = arith.constant 0 : i32
    %c0_i32_0 = arith.constant 0 : i32
    return %arg0, %c0_i32 : i32, i32
  }
  func.func @transform_1(%arg0: i32) -> (i32, i32) {
    %c0_i32 = arith.constant 0 : i32
    %c0_i32_0 = arith.constant 0 : i32
    return %arg0, %c0_i32 : i32, i32
  }
  func.func @transform_2(%arg0: i32) -> (i32, i32) {
    %c0_i32 = arith.constant 0 : i32
    %c0_i32_0 = arith.constant 0 : i32
    %c0_i32_1 = arith.constant 0 : i32
    return %c0_i32, %c0_i32_0 : i32, i32
  }
  func.func @transform_3(%arg0: i32) -> (i32, i32) {
    %c0_i32 = arith.constant 0 : i32
    %c0_i32_0 = arith.constant 0 : i32
    %c0_i32_1 = arith.constant 0 : i32
    return %c0_i32, %c0_i32_0 : i32, i32
  }
}

</mosaic_0001>

<bundles_post_ra>
// kernel: squeeze.2
= control target key start
LH: loop header
LB: loop body
LE: loop exit
PB: predicated region body
PF: predicated region fallthrough
CT: control target
= control target key end

     0   :  { %s67_s8 = smov 112   ;;  %s68_s11 = smov 80   ;;  %vm3_vm0 = vcmask 130048   ;;  %vm9_vm1 = vcmask 1048448   ;;  %vm15_vm2 = vcmask 917248   ;;  %vm21_vm3 = vcmask 786048   ;;  %s111_s0 = inlined_call_operand.vmem [shape: f32[2,1,16,16], index: 0, kind: input, shape index: {}]   ;;  %s112_s1 = inlined_call_operand.vmem [shape: f32[512], index: 1, kind: output, shape index: {}]  }
   0x1   :  { %v53_v0 = vld [vmem:[%s111_s0 + $0x7] ss:$8 sm:$0xf]   ;;  %v55_v1 = vld [vmem:[%s111_s0 + $0x5] ss:$8 sm:$0xf]  }
   0x2   :  { %7 = vrot.lane.b32.xlu0 %v53_v0, %s67_s8  ;;  %19 = vrot.lane.b32.xlu1 %v55_v1, %s68_s11  ;;  %v57_v2 = vld [vmem:[%s111_s0 + $0x3] ss:$8 sm:$0xf]   ;;  %s69_s14 = smov 48   ;;  %s70_s19 = smov 96   ;;  %vm27_vm4 = vcmask 654848  }
   0x3   :  { %31 = vrot.lane.b32.xlu2 %v57_v2, %s69_s14  ;;  %v54_v3 = vld [vmem:[%s111_s0 + $0x6] ss:$8 sm:$0xf]   ;;  %v56_v4 = vld [vmem:[%s111_s0 + $0x4] ss:$8 sm:$0xf]  }
   0x4   :  { %s71_s20 = smov 64   ;;  %v58_v5 = vld [vmem:[%s111_s0 + $0x2] ss:$8 sm:$0xf]   ;;  %s72_s23 = smov 32   ;;  %vm33_vm5 = vcmask 523648  }
   0x5   :  { %v59_v6 = vld [vmem:[%s111_s0 + $0x1] ss:$8 sm:$0xf]   ;;  %s73_s26 = smov 16   ;;  %vm39_vm6 = vcmask 392448   ;;  %vm45_vm7 = vcmask 261248  }
   0x6   :  { %v2_v7 = vld [vmem:[%s111_s0] ss:$8 sm:$0xf]  }
   0x7   :  { %4 = vst.msk [vmem:[#allocation0] sm:$0xf] %vm3_vm0, %v2_v7  }
   0xa   :  { %13 = vrot.lane.b32.xlu0 %v54_v3, %s70_s19  ;;  %25 = vrot.lane.b32.xlu1 %v56_v4, %s71_s20 }
   0xb   :  { %37 = vrot.lane.b32.xlu2 %v58_v5, %s72_s23 }
  0x12   :  { %43 = vrot.lane.b32.xlu0 %v59_v6, %s73_s26 }
  0x5d   :  { %v32_v8 = vpop.permute.xlu2 %31  }
  0x65   :  { %v38_v9 = vpop.permute.xlu2 %37  }
  0x74   :  { %v8_v10 = vpop.permute.xlu0 %7   ;;  %v20_v11 = vpop.permute.xlu1 %19  }
  0x75   :  { %10 = vst.msk [vmem:[#allocation0] sm:$0xf] %vm9_vm1, %v8_v10  }
  0x7c   :  { %v14_v12 = vpop.permute.xlu0 %13   ;;  %v26_v13 = vpop.permute.xlu1 %25  }
  0x7d   :  { %16 = vst.msk [vmem:[#allocation0] sm:$0xf] %vm15_vm2, %v14_v12  }
  0x7e   :  { %22 = vst.msk [vmem:[#allocation0] sm:$0xf] %vm21_vm3, %v20_v11  }
  0x7f   :  { %28 = vst.msk [vmem:[#allocation0] sm:$0xf] %vm27_vm4, %v26_v13  }
  0x80   :  { %34 = vst.msk [vmem:[#allocation0] sm:$0xf] %vm33_vm5, %v32_v8  }
  0x81   :  { %40 = vst.msk [vmem:[#allocation0] sm:$0xf] %vm39_vm6, %v38_v9  }
  0x84   :  { %v44_v14 = vpop.permute.xlu0 %43  }
  0x85   :  { %46 = vst.msk [vmem:[#allocation0] sm:$0xf] %vm45_vm7, %v44_v14  }
  0x8c   :  { %v49_v15 = vld [vmem:[#allocation0] sm:$0xf] }
  0x8d   :  { %52 = vst [vmem:[%s112_s1] sm:$0xf] %v49_v15 }

// kernel: wsdice_loss_binary.1
= control target key start
LH: loop header
LB: loop body
LE: loop exit
PB: predicated region body
PF: predicated region fallthrough
CT: control target
= control target key end

     0   :  { %v176_v6 = vlaneseq  ;;  %s341_s0 = inlined_call_operand.vmem [shape: f32[8,512], index: 0, kind: input, shape index: {}]   ;;  %s342_s1 = inlined_call_operand.vmem [shape: f32[8,512], index: 1, kind: input, shape index: {}]   ;;  %s343_s2 = inlined_call_operand.vmem [shape: f32[8,512], index: 2, kind: output, shape index: {0}]   ;;  %s344_s3 = inlined_call_operand.vmem [shape: f32[8,512], index: 3, kind: output, shape index: {1}]  }
   0x1   :  { %v120_v0 = vld [vmem:[%s341_s0] sm:$0xff]  ;;  %v121_v2 = vld [vmem:[%s341_s0 + $0x8] sm:$0xff]  ;;  %v122_v11 = vld [vmem:[%s341_s0 + $0x10] sm:$0xff] }
   0x2   :  { %v124_v1 = vld [vmem:[%s342_s1] sm:$0xff]  ;;  %v128_v3 = vmul.f32 0.5, %v120_v0  ;;  %v125_v7 = vld [vmem:[%s342_s1 + $0x8] sm:$0xff]  ;;  %v129_v8 = vmul.f32 0.5, %v121_v2  ;;  %v126_v12 = vld [vmem:[%s342_s1 + $0x10] sm:$0xff]  ;;  %v130_v19 = vmul.f32 0.5, %v122_v11 }
   0x3   :  { %v136_v4 = vmul.f32 2.0, %v124_v1  ;;  %v144_v5 = vmul.f32 -0.7, %v124_v1  ;;  %v137_v9 = vmul.f32 2.0, %v125_v7  ;;  %v145_v10 = vmul.f32 -0.7, %v125_v7 }
   0x4   :  { %257 = vtanh.f32 %v128_v3  ;;  %v123_v15 = vld [vmem:[%s341_s0 + $0x18] sm:$0xff]  ;;  %v177_v20 = vshrl.u32 %v176_v6, 7  ;;  %v138_v21 = vmul.f32 2.0, %v126_v12  ;;  %v146_v22 = vmul.f32 -0.7, %v126_v12 }
   0x5   :  { %v252_v13 = vadd.f32 -1.0, %v136_v4  ;;  %v148_v14 = vadd.f32 0.85, %v144_v5  ;;  %v127_v16 = vld [vmem:[%s342_s1 + $0x18] sm:$0xff]  ;;  %259 = vtanh.f32 %v129_v8  ;;  %v253_v17 = vadd.f32 -1.0, %v137_v9 }
   0x6   :  { %v149_v18 = vadd.f32 0.85, %v145_v10  ;;  %v131_v23 = vmul.f32 0.5, %v123_v15  ;;  %261 = vtanh.f32 %v130_v19  ;;  %v139_v25 = vmul.f32 2.0, %v127_v16 }
   0x7   :  { %v156_v24 = vmul.f32 %v252_v13, %v148_v14  ;;  %v147_v26 = vmul.f32 -0.7, %v127_v16  ;;  %v254_v28 = vadd.f32 -1.0, %v138_v21  ;;  %v150_v29 = vadd.f32 0.85, %v146_v22 }
   0x8   :  { %v157_v27 = vmul.f32 %v253_v17, %v149_v18  ;;  %263 = vtanh.f32 %v131_v23  ;;  %v255_v30 = vadd.f32 -1.0, %v139_v25  ;;  %vm186_vm0 = vcmp.lt.s32.totalorder %v177_v20, 1 }
   0x9   :  { %v151_v31 = vadd.f32 0.85, %v147_v26  ;;  %v158_v33 = vmul.f32 %v254_v28, %v150_v29  ;;  %v168_v37 = vmul.f32 %v156_v24, %v156_v24 }
   0xa   :  { %v258_v32 = vpop.eup %257  ;;  %v169_v39 = vmul.f32 %v157_v27, %v157_v27 }
   0xb   :  { %v260_v34 = vpop.eup %259  ;;  %v152_v35 = vmul.f32 %v258_v32, %v148_v14  ;;  %v159_v36 = vmul.f32 %v255_v30, %v151_v31  ;;  %v170_v47 = vmul.f32 %v158_v33, %v158_v33 }
   0xc   :  { %v153_v38 = vmul.f32 %v260_v34, %v149_v18  ;;  %v262_v40 = vpop.eup %261 }
   0xd   :  { %v160_v41 = vmul.f32 %v156_v24, %v152_v35  ;;  %v164_v42 = vmul.f32 %v152_v35, %v152_v35  ;;  %v154_v45 = vmul.f32 %v262_v40, %v150_v29  ;;  %v171_v51 = vmul.f32 %v159_v36, %v159_v36 }
   0xe   :  { %v264_v43 = vpop.eup %263  ;;  %v161_v44 = vmul.f32 %v157_v27, %v153_v38  ;;  %v165_v46 = vmul.f32 %v153_v38, %v153_v38 }
   0xf   :  { %v200_v48 = vsel %vm186_vm0, %v160_v41, 0.0  ;;  %v155_v49 = vmul.f32 %v264_v43, %v151_v31  ;;  %v172_v50 = vadd.f32 %v168_v37, %v164_v42  ;;  %v162_v53 = vmul.f32 %v158_v33, %v154_v45 }
  0x10   :  { %v201_v52 = vsel %vm186_vm0, %v161_v44, 0.0  ;;  %v173_v54 = vadd.f32 %v169_v39, %v165_v46  ;;  %v166_v57 = vmul.f32 %v154_v45, %v154_v45  ;;  %220 = vst [vmem:[%s343_s2] sm:$0xff] %v200_v48 }
  0x11   :  { %v163_v55 = vmul.f32 %v159_v36, %v155_v49  ;;  %v204_v56 = vsel %vm186_vm0, %v172_v50, 0.0  ;;  %v202_v58 = vsel %vm186_vm0, %v162_v53, 0.0  ;;  %v167_v60 = vmul.f32 %v155_v49, %v155_v49  ;;  %221 = vst [vmem:[%s343_s2 + $0x8] sm:$0xff] %v201_v52 }
  0x12   :  { %v205_v59 = vsel %vm186_vm0, %v173_v54, 0.0  ;;  %v174_v62 = vadd.f32 %v170_v47, %v166_v57  ;;  %236 = vst [vmem:[%s344_s3] sm:$0xff] %v204_v56 }
  0x13   :  { %v203_v61 = vsel %vm186_vm0, %v163_v55, 0.0  ;;  %v175_v63 = vadd.f32 %v171_v51, %v167_v60  ;;  %222 = vst [vmem:[%s343_s2 + $0x10] sm:$0xff] %v202_v58 }
  0x14   :  { %v206_v0 = vsel %vm186_vm0, %v174_v62, 0.0  ;;  %223 = vst [vmem:[%s343_s2 + $0x18] sm:$0xff] %v203_v61 }
  0x15   :  { %v207_v1 = vsel %vm186_vm0, %v175_v63, 0.0  ;;  %237 = vst [vmem:[%s344_s3 + $0x8] sm:$0xff] %v205_v59 }
  0x16   :  { %238 = vst [vmem:[%s344_s3 + $0x10] sm:$0xff] %v206_v0 }
  0x17   :  { %239 = vst [vmem:[%s344_s3 + $0x18] sm:$0xff] %v207_v1 }

</bundles_post_ra>
